<compile_context>
chip_gen: v5e
topology: v5e:2x2
jax: 0.10.0
libtpu: 0.0.40
codegen_flags: <defaults>
</compile_context>

<pallas_src>
import functools

import jax
import jax.numpy as jnp
from jax.experimental import pallas as pl
from jax.experimental.pallas import tpu as pltpu


def _nt_xent_denominator_kernel(rows_ref, cols_ref, invn_row_ref, invn_col_ref,
                                out_ref, *, scale, mxu_precision):
    """One (tm, tn) tile of the (2B, 2B) similarity matrix.

    rows_ref:     (tm, D)  un-normalized rows of reps          (MXU lhs)
    cols_ref:     (D, tn)  un-normalized reps^T column block   (MXU rhs)
    invn_row_ref: (tm, 1)  f32 inverse L2 norms of the rows
    invn_col_ref: (1, tn)  f32 inverse L2 norms of the columns
    out_ref:      (tm, 1)  f32 running denominator -> log(denominator)
    """
    i = pl.program_id(0)            # row-block index  ("parallel")
    j = pl.program_id(1)            # col-block index  (reduction, "arbitrary")
    tm = rows_ref.shape[0]
    tn = cols_ref.shape[1]

    @pl.when(j == 0)
    def _init():
        out_ref[...] = jnp.zeros_like(out_ref)

    # Raw Gram tile on the MXU with f32 accumulation.
    gram = jnp.dot(rows_ref[...], cols_ref[...],
                   preferred_element_type=jnp.float32,
                   precision=mxu_precision)                       # (tm, tn)

    # Post-matmul rank-1 normalization: Gram of the L2-normalized rows.
    gram = gram * invn_row_ref[...] * invn_col_ref[...]

    # sim = -||a-b||^2 = 2*(gram - 1);  exp(sim/T) = exp(scale*(gram - 1)),
    # scale = 2/T.  Exponents <= 0 for unit rows -> overflow-proof, no max.
    e = jnp.exp(scale * (gram - 1.0))

    # Exact diagonal (self-similarity) exclusion -> the negatives_mask.
    row_ids = i * tm + jax.lax.broadcasted_iota(jnp.int32, (tm, tn), 0)
    col_ids = j * tn + jax.lax.broadcasted_iota(jnp.int32, (tm, tn), 1)
    e = jnp.where(row_ids == col_ids, 0.0, e)

    out_ref[...] += jnp.sum(e, axis=1, keepdims=True)             # (tm, 1)

    @pl.when(j == pl.num_programs(1) - 1)
    def _finalize():
        out_ref[...] = jnp.log(out_ref[...])


def _pick_tile(n, cap, align):
    """Largest multiple-of-`align` divisor of n that is <= cap, else n."""
    if n <= cap:
        return n
    t = (cap // align) * align
    while t >= align:
        if n % t == 0:
            return t
        t -= align
    return n  # no aligned divisor: use the full extent (always legal)


def contrastive_loss(emb_i, emb_j, temperature=0.5, *, block_rows=None,
                     block_cols=None, use_bf16_matmul=True):
    B, D = emb_i.shape
    assert emb_j.shape == (B, D)
    N = 2 * B
    scale = 2.0 / float(temperature)

    x_i = emb_i.astype(jnp.float32)
    x_j = emb_j.astype(jnp.float32)

    # Per-row inverse L2 norms (F.normalize eps semantics: x / max(||x||,1e-12)),
    # computed once (O(N*D)) and applied post-matmul inside the kernel.
    def inv_norm(x):
        return 1.0 / jnp.maximum(jnp.sqrt(jnp.sum(x * x, axis=1)), 1e-12)

    invn = jnp.concatenate([inv_norm(x_i), inv_norm(x_j)], axis=0)       # (N,)

    # Un-normalized representations streamed to the MXU; bf16 operands by
    # default (f32 accumulation in-kernel).  reps_t is transposed ONCE here so
    # the kernel rhs tile is already (D, tn) -- no per-step transpose.
    mat_dtype = jnp.bfloat16 if use_bf16_matmul else jnp.float32
    reps = jnp.concatenate([emb_i, emb_j], axis=0).astype(mat_dtype)     # (N, D)
    reps_t = reps.T                                                      # (D, N)

    invn_row = invn.reshape(N, 1)
    invn_col = invn.reshape(1, N)

    # Tile sizes: rows need sublane alignment (8) or full N; columns need lane
    # alignment (128) or full N.
    tm = _pick_tile(N, 256, 8) if block_rows is None else block_rows
    tn = _pick_tile(N, 512, 128) if block_cols is None else block_cols
    assert N % tm == 0 and (tm == N or tm % 8 == 0), (N, tm)
    assert N % tn == 0 and (tn == N or tn % 128 == 0), (N, tn)
    grid = (N // tm, N // tn)

    # Explicit VMEM budget: double-buffered input tiles + f32 temporaries.
    in_bytes = jnp.dtype(mat_dtype).itemsize
    vmem_est = (2 * tm * D * in_bytes + 2 * D * tn * in_bytes
                + 2 * (tm + tn + tm) * 4 + 4 * tm * tn * 4)
    vmem_limit = int(min(max(2 * vmem_est, 32 * 1024 * 1024), 96 * 1024 * 1024))

    kernel = functools.partial(
        _nt_xent_denominator_kernel, scale=scale,
        mxu_precision=None if use_bf16_matmul else jax.lax.Precision.HIGHEST)

    log_denom = pl.pallas_call(
        kernel,
        out_shape=jax.ShapeDtypeStruct((N, 1), jnp.float32),
        grid=grid,
        in_specs=[
            pl.BlockSpec((tm, D), lambda i, j: (i, 0)),  # reps rows (resident over j)
            pl.BlockSpec((D, tn), lambda i, j: (0, j)),  # reps^T column block
            pl.BlockSpec((tm, 1), lambda i, j: (i, 0)),  # row inverse norms
            pl.BlockSpec((1, tn), lambda i, j: (0, j)),  # column inverse norms
        ],
        out_specs=pl.BlockSpec((tm, 1), lambda i, j: (i, 0)),
        compiler_params=pltpu.CompilerParams(
            dimension_semantics=("parallel", "arbitrary"),
            vmem_limit_bytes=vmem_limit,
        ),
    )(reps, reps_t, invn_row, invn_col)

    # Positive-pair term, O(B*D), once, in f32 (wrapper):
    #   sum_n g_pos,n = 2 * sum_k <z_i[k], z_j[k]>
    pos_dot = jnp.sum(jnp.sum(x_i * x_j, axis=1) * invn[:B] * invn[B:])

    # loss = (1/N) * sum_n [ -sim_pos,n/T + log(denominator_n) ]
    #      = ( sum log(denom) + N*scale - 2*scale*pos_dot ) / N
    return (jnp.sum(log_denom) + N * scale - 2.0 * scale * pos_dot) / N


def _reference_loss(emb_i, emb_j, temperature=0.5):
    # Pure-JAX reference mirroring the PyTorch module exactly.
    def norm(x):
        return x / jnp.maximum(jnp.linalg.norm(x, axis=1, keepdims=True), 1e-12)
    B = emb_i.shape[0]
    reps = jnp.concatenate([norm(emb_i), norm(emb_j)], axis=0)
    diff = reps[:, None, :] - reps[None, :, :]
    sim = -jnp.sum(diff * diff, axis=2)
    N = 2 * B
    idx = jnp.arange(N)
    positives = sim[idx, (idx + B) % N]
    neg_mask = 1.0 - jnp.eye(N)
    denom = jnp.sum(neg_mask * jnp.exp(sim / temperature), axis=1)
    loss_partial = -jnp.log(jnp.exp(positives / temperature) / denom)
    return jnp.sum(loss_partial) / N


if __name__ == "__main__":
    key = jax.random.PRNGKey(0)
    k1, k2, k3, k4 = jax.random.split(key, 4)

    # Tiny case: single (1,1) grid step; exact f32 MXU path.
    B, D = 4, 32
    emb_i = jax.random.normal(k1, (B, D), dtype=jnp.float32)
    emb_j = jax.random.normal(k2, (B, D), dtype=jnp.float32)
    loss = contrastive_loss(emb_i, emb_j, temperature=0.5, use_bf16_matmul=False)
    jax.block_until_ready(loss)
    ref = _reference_loss(emb_i, emb_j, temperature=0.5)
    assert jnp.allclose(loss, ref, rtol=1e-4, atol=1e-3), (loss, ref)

    # Tiled case: 2-D grid (4 row blocks x 2 column blocks), exact f32 path.
    B2, D2 = 128, 64
    emb_i2 = jax.random.normal(k3, (B2, D2), dtype=jnp.float32)
    emb_j2 = jax.random.normal(k4, (B2, D2), dtype=jnp.float32)
    ref2 = _reference_loss(emb_i2, emb_j2, temperature=0.5)
    loss2 = contrastive_loss(emb_i2, emb_j2, temperature=0.5,
                             block_rows=64, block_cols=128,
                             use_bf16_matmul=False)
    jax.block_until_ready(loss2)
    assert jnp.allclose(loss2, ref2, rtol=1e-4, atol=1e-3), (loss2, ref2)

    # Default path: bf16 MXU operands (f32 accumulation) -> looser tolerance.
    loss3 = contrastive_loss(emb_i2, emb_j2, temperature=0.5,
                             block_rows=64, block_cols=128)
    jax.block_until_ready(loss3)
    assert jnp.allclose(loss3, ref2, rtol=2e-2, atol=3e-2), (loss3, ref2)

    print("KERNEL_OK")
</pallas_src>

<mosaic_0001>
module attributes {stable_mosaic.version = 11 : i64} {
  func.func @_nt_xent_denominator_kernel(%arg0: i32, %arg1: i32, %arg2: memref<8x32xf32, #tpu.memory_space<vmem>>, %arg3: memref<32x8xf32, #tpu.memory_space<vmem>>, %arg4: memref<8x1xf32, #tpu.memory_space<vmem>>, %arg5: memref<1x8xf32, #tpu.memory_space<vmem>>, %arg6: memref<8x1xf32, #tpu.memory_space<vmem>>) attributes {dimension_semantics = [#tpu.dimension_semantics<parallel>, #tpu.dimension_semantics<arbitrary>], iteration_bounds = array<i64: 1, 1>, scalar_prefetch = 0 : i64, scratch_operands = 0 : i64, tpu.core_type = #tpu.core_type<tc>, window_params = [{transform_indices = @transform_0, window_bounds = array<i64: 8, 32>}, {transform_indices = @transform_1, window_bounds = array<i64: 32, 8>}, {transform_indices = @transform_2, window_bounds = array<i64: 8, 1>}, {transform_indices = @transform_3, window_bounds = array<i64: 1, 8>}, {transform_indices = @transform_4, window_bounds = array<i64: 8, 1>}]} {
    %c0_i32 = arith.constant 0 : i32
    %0 = arith.cmpi eq, %arg1, %c0_i32 : i32
    %1 = arith.extui %0 : i1 to i32
    %c0_i32_0 = arith.constant 0 : i32
    %2 = arith.cmpi ne, %1, %c0_i32_0 : i32
    scf.if %2 {
      %cst_19 = arith.constant 0.000000e+00 : f32
      %36 = vector.broadcast %cst_19 : f32 to vector<8x1xf32>
      %c0_20 = arith.constant 0 : index
      %c0_21 = arith.constant 0 : index
      %37 = vector.load %arg6[%c0_20, %c0_21] : memref<8x1xf32, #tpu.memory_space<vmem>>, vector<8x1xf32>
      tpu.vector_store %arg6[%c0_20, %c0_21], %36 {strides = array<i32>} : memref<8x1xf32, #tpu.memory_space<vmem>>, vector<8x1xf32>,
    } else {
    }
    %c0 = arith.constant 0 : index
    %c0_1 = arith.constant 0 : index
    %3 = vector.load %arg2[%c0, %c0_1] : memref<8x32xf32, #tpu.memory_space<vmem>>, vector<8x32xf32>
    %c0_2 = arith.constant 0 : index
    %c0_3 = arith.constant 0 : index
    %4 = vector.load %arg3[%c0_2, %c0_3] : memref<32x8xf32, #tpu.memory_space<vmem>>, vector<32x8xf32>
    %cst = arith.constant dense<0.000000e+00> : vector<8x8xf32>
    %5 = tpu.matmul %3, %4, %cst {dimension_numbers = #tpu.dot_dimension_numbers<[1], [0], [0], [1], [0, 0, 1, 1], [], []>, precision = #tpu.contract_precision<fp32>} : vector<8x32xf32>, vector<32x8xf32>, vector<8x8xf32> -> vector<8x8xf32>
    %c0_4 = arith.constant 0 : index
    %c0_5 = arith.constant 0 : index
    %6 = vector.load %arg4[%c0_4, %c0_5] : memref<8x1xf32, #tpu.memory_space<vmem>>, vector<8x1xf32>
    %7 = vector.broadcast %6 : vector<8x1xf32> to vector<8x8xf32>
    %8 = arith.mulf %5, %7 : vector<8x8xf32>
    %c0_6 = arith.constant 0 : index
    %c0_7 = arith.constant 0 : index
    %9 = vector.load %arg5[%c0_6, %c0_7] : memref<1x8xf32, #tpu.memory_space<vmem>>, vector<1x8xf32>
    %10 = vector.broadcast %9 : vector<1x8xf32> to vector<8x8xf32>
    %11 = arith.mulf %8, %10 : vector<8x8xf32>
    %cst_8 = arith.constant 1.000000e+00 : f32
    %12 = vector.broadcast %cst_8 : f32 to vector<8x8xf32>
    %13 = arith.subf %11, %12 : vector<8x8xf32>
    %cst_9 = arith.constant 4.000000e+00 : f32
    %14 = vector.broadcast %cst_9 : f32 to vector<8x8xf32>
    %15 = arith.mulf %14, %13 : vector<8x8xf32>
    %16 = math.exp %15 : vector<8x8xf32>
    %c8_i32 = arith.constant 8 : i32
    %17 = arith.muli %arg0, %c8_i32 : i32
    %18 = tpu.iota {dimensions = array<i32: 0>} : vector<8x8xi32>
    %19 = vector.broadcast %17 : i32 to vector<8x8xi32>
    %20 = arith.addi %19, %18 : vector<8x8xi32>
    %c8_i32_10 = arith.constant 8 : i32
    %21 = arith.muli %arg1, %c8_i32_10 : i32
    %22 = tpu.iota {dimensions = array<i32: 1>} : vector<8x8xi32>
    %23 = vector.broadcast %21 : i32 to vector<8x8xi32>
    %24 = arith.addi %23, %22 : vector<8x8xi32>
    %25 = arith.cmpi eq, %20, %24 : vector<8x8xi32>
    %cst_11 = arith.constant 0.000000e+00 : f32
    %26 = vector.broadcast %cst_11 : f32 to vector<8x8xf32>
    %27 = arith.select %25, %26, %16 : vector<8x8xi1>, vector<8x8xf32>
    %c0_12 = arith.constant 0 : index
    %c0_13 = arith.constant 0 : index
    %28 = vector.load %arg6[%c0_12, %c0_13] : memref<8x1xf32, #tpu.memory_space<vmem>>, vector<8x1xf32>
    %cst_14 = arith.constant dense<0.000000e+00> : vector<8xf32>
    %29 = vector.multi_reduction <add>, %27, %cst_14 [1] : vector<8x8xf32> to vector<8xf32>
    %30 = vector.shape_cast %29 : vector<8xf32> to vector<8x1xf32>
    %31 = arith.addf %28, %30 : vector<8x1xf32>
    %c0_15 = arith.constant 0 : index
    %c0_16 = arith.constant 0 : index
    %32 = vector.load %arg6[%c0_15, %c0_16] : memref<8x1xf32, #tpu.memory_space<vmem>>, vector<8x1xf32>
    tpu.vector_store %arg6[%c0_15, %c0_16], %31 {strides = array<i32>} : memref<8x1xf32, #tpu.memory_space<vmem>>, vector<8x1xf32>,
    %c0_i32_17 = arith.constant 0 : i32
    %33 = arith.cmpi eq, %arg1, %c0_i32_17 : i32
    %34 = arith.extui %33 : i1 to i32
    %c0_i32_18 = arith.constant 0 : i32
    %35 = arith.cmpi ne, %34, %c0_i32_18 : i32
    scf.if %35 {
      %c0_19 = arith.constant 0 : index
      %c0_20 = arith.constant 0 : index
      %36 = vector.load %arg6[%c0_19, %c0_20] : memref<8x1xf32, #tpu.memory_space<vmem>>, vector<8x1xf32>
      %37 = math.log %36 : vector<8x1xf32>
      %c0_21 = arith.constant 0 : index
      %c0_22 = arith.constant 0 : index
      %38 = vector.load %arg6[%c0_21, %c0_22] : memref<8x1xf32, #tpu.memory_space<vmem>>, vector<8x1xf32>
      tpu.vector_store %arg6[%c0_21, %c0_22], %37 {strides = array<i32>} : memref<8x1xf32, #tpu.memory_space<vmem>>, vector<8x1xf32>,
    } else {
    }
    return
  }
  func.func @transform_0(%arg0: i32, %arg1: i32) -> (i32, i32) {
    %c0_i32 = arith.constant 0 : i32
    %c0_i32_0 = arith.constant 0 : i32
    return %arg0, %c0_i32 : i32, i32
  }
  func.func @transform_1(%arg0: i32, %arg1: i32) -> (i32, i32) {
    %c0_i32 = arith.constant 0 : i32
    %c0_i32_0 = arith.constant 0 : i32
    return %c0_i32, %arg1 : i32, i32
  }
  func.func @transform_2(%arg0: i32, %arg1: i32) -> (i32, i32) {
    %c0_i32 = arith.constant 0 : i32
    %c0_i32_0 = arith.constant 0 : i32
    return %arg0, %c0_i32 : i32, i32
  }
  func.func @transform_3(%arg0: i32, %arg1: i32) -> (i32, i32) {
    %c0_i32 = arith.constant 0 : i32
    %c0_i32_0 = arith.constant 0 : i32
    return %c0_i32, %arg1 : i32, i32
  }
  func.func @transform_4(%arg0: i32, %arg1: i32) -> (i32, i32) {
    %c0_i32 = arith.constant 0 : i32
    %c0_i32_0 = arith.constant 0 : i32
    return %arg0, %c0_i32 : i32, i32
  }
}

</mosaic_0001>

<bundles_post_ra>
// kernel: tpu_custom_call.1
= control target key start
LH: loop header
LB: loop body
LE: loop exit
PB: predicated region body
PF: predicated region fallthrough
CT: control target
= control target key end

     0   :  { %vm28_vm0 = vcmask 261120   ;;  %v273_v3 = vmov 0   ;;  %vm21_vm1 = vcmask 7168   ;;  %v274_v34 = vmov 0.0   ;;  %s339_s1 = inlined_call_operand.vmem [shape: f32[32,8], index: 1, kind: input, shape index: {}]   ;;  %s340_s0 = inlined_call_operand.vmem [shape: f32[8,32], index: 0, kind: input, shape index: {}]   ;;  %s341_s2 = inlined_call_operand.vmem [shape: f32[8,1], index: 2, kind: input, shape index: {}]   ;;  %s342_s3 = inlined_call_operand.vmem [shape: f32[1,8], index: 3, kind: input, shape index: {}]   ;;  %s343_s4 = inlined_call_operand.vmem [shape: f32[8,1], index: 4, kind: output, shape index: {}]  }
   0x1   :  { %v27_v0 = vld [vmem:[%s339_s1 + $0x18] sm:$0xff]  ;;  %v26_v1 = vld [vmem:[%s339_s1 + $0x10] sm:$0xff]  ;;  %v25_v2 = vld [vmem:[%s339_s1 + $0x8] sm:$0xff]  ;;  %267 = vset.pattern.permute.xlu0 %v273_v3  ;;  %22 = vst.msk [vmem:[%s343_s4] sm:$0xff] %vm21_vm1, %v274_v34  ;;  %v234_v51 = vlaneseq  ;;  %vm246_vm3 = vcmask 64512  }
   0x2   :  { %v44_v4 = vand.u32 4294901760, %v27_v0  ;;  %v46_v5 = vand.u32 4294901760, %v26_v1  ;;  %v48_v6 = vand.u32 4294901760, %v25_v2  ;;  %v24_v7 = vld [vmem:[%s339_s1] sm:$0xff] }
   0x3   :  { %v23_v8 = vld [vmem:[%s340_s0] sm:$0xff]  ;;  %v50_v10 = vand.u32 4294901760, %v24_v7  ;;  %v235_v53 = vshrl.u32 %v234_v51, 7  ;;  %v240_v54 = vand.u32 127, %v234_v51 }
   0x4   :  { %v217_v9 = vld [vmem:[%s341_s2] sm:$0xff]  ;;  %v30_v11 = vsel %vm28_vm0, %v23_v8, 0  ;;  %v74_v12 = vsub.f32 %v27_v0, %v44_v4  ;;  %45 = vmatpush.msra.mxu0 %v44_v4  ;;  %v80_v13 = vsub.f32 %v26_v1, %v46_v5  ;;  %145 = vmatpush.msra.mxu3 %v44_v4  ;;  %v86_v14 = vsub.f32 %v25_v2, %v48_v6 }
   0x5   :  { %220 = vperm.xlu0 %267, %v217_v9   ;;  %v52_v15 = vand.u32 4294901760, %v30_v11  ;;  %v92_v16 = vsub.f32 %v24_v7, %v50_v10  ;;  %v268_v46 = vld [vmem:[%s342_s3] ss:$0 sm:$0xff]  ;;  %vm243_vm2 = vcmp.eq.s32.totalorder %v235_v53, %v240_v54 }
   0x6   :  { %116 = vmatpush.msra.mxu2 %v74_v12  ;;  %47 = vmatpush.msra.mxu0 %v46_v5  ;;  %v75_v17 = vand.u32 4294901760, %v74_v12  ;;  %v81_v18 = vand.u32 4294901760, %v80_v13  ;;  %v87_v20 = vand.u32 4294901760, %v86_v14 }
   0x7   :  { %v53_v19 = vsub.f32 %v30_v11, %v52_v15  ;;  %147 = vmatpush.msra.mxu3 %v46_v5  ;;  %v93_v21 = vand.u32 4294901760, %v92_v16 }
   0x8   :  { %119 = vmatpush.msra.mxu2 %v80_v13  ;;  %v76_v22 = vsub.f32 %v74_v12, %v75_v17  ;;  %49 = vmatpush.msra.mxu0 %v48_v6  ;;  %v82_v23 = vsub.f32 %v80_v13, %v81_v18  ;;  %v88_v24 = vsub.f32 %v86_v14, %v87_v20  ;;  %v245_v58 = vld [vmem:[%s343_s4] sm:$0xff] }
   0x9   :  { %v54_v25 = vand.u32 4294901760, %v53_v19  ;;  %149 = vmatpush.msra.mxu3 %v48_v6  ;;  %v94_v29 = vsub.f32 %v92_v16, %v93_v21 }
   0xa   :  { %v77_v26 = vand.u32 4294901760, %v76_v22  ;;  %122 = vmatpush.msra.mxu2 %v86_v14  ;;  %v83_v27 = vand.u32 4294901760, %v82_v23  ;;  %51 = vmatpush.msra.mxu0 %v50_v10  ;;  %v89_v30 = vand.u32 4294901760, %v88_v24 }
   0xb   :  { %v55_v28 = vsub.f32 %v53_v19, %v54_v25  ;;  %151 = vmatpush.msra.mxu3 %v50_v10  ;;  %v95_v32 = vand.u32 4294901760, %v94_v29 }
   0xc   :  { %174 = vmatpush.msrb.mxu0 %v75_v17  ;;  %78 = vmatpush.msra.mxu1 %v77_v26 }
   0xd   :  { %125 = vmatpush.msra.mxu2 %v92_v16  ;;  %v56_v31 = vand.u32 4294901760, %v55_v28  ;;  %155 = vmatmul.f32.vlgmr.msra.gmra.mxu3 %v54_v25 }
   0xe   :  { %128 = vmatmul.f32.vlgmr.msra.gmra.mxu2 %v53_v19  ;;  %84 = vmatpush.msra.mxu1 %v83_v27 }
   0xf   :  { %57 = vmatmul.f32.vlgmr.msra.gmra.mxu0 %v56_v31 }
  0x10   :  { %178 = vmatpush.msrb.mxu0 %v81_v18  ;;  %90 = vmatpush.msra.mxu1 %v89_v30 }
  0x12   :  { %182 = vmatpush.msrb.mxu0 %v87_v20  ;;  %96 = vmatpush.msra.mxu1 %v95_v32 }
  0x13   :  { %98 = vmatmul.f32.vlgmr.msra.gmra.mxu1 %v52_v15 }
  0x14   :  { %186 = vmatpush.msrb.mxu0 %v93_v21  ;;  %205 = vmatpush.msrb.mxu1 %v44_v4 }
  0x16   :  { %207 = vmatpush.msrb.mxu1 %v46_v5 }
  0x17   :  { %188 = vmatmul.f32.vlgmr.msrb.gmra.mxu0 %v52_v15 }
  0x18   :  { %209 = vmatpush.msrb.mxu1 %v48_v6 }
  0x1a   :  { %211 = vmatpush.msrb.mxu1 %v50_v10 }
  0x1b   :  { %213 = vmatmul.f32.vlgmr.msrb.gmra.mxu1 %v52_v15 }
  0x77   :  { %v221_v44 = vpop.permute.xlu0 %220 }
  0x8c   :  { %v58_v33 = vpop.f32.mrf.mxu0 }
  0x90   :  { %v99_v35 = vpop.f32.mrf.mxu1  ;;  %v156_v38 = vpop.f32.mrf.mxu3 }
  0x91   :  { %v129_v36 = vpop.f32.mrf.mxu2  ;;  %v100_v37 = vadd.f32 %v99_v35, %v58_v33 }
  0x93   :  { %v130_v39 = vadd.f32 %v129_v36, %v100_v37 }
  0x94   :  { %v189_v40 = vpop.f32.mrf.mxu0 }
  0x95   :  { %v157_v41 = vadd.f32 %v156_v38, %v130_v39 }
  0x97   :  { %v190_v42 = vadd.f32 %v189_v40, %v157_v41 }
  0x98   :  { %v214_v43 = vpop.f32.mrf.mxu1 }
  0x99   :  { %v215_v45 = vadd.f32 %v214_v43, %v190_v42 }
  0x9b   :  { %v223_v47 = vmul.f32 %v221_v44, %v215_v45 }
  0x9d   :  { %v228_v48 = vmul.f32 %v268_v46, %v223_v47 }
  0x9f   :  { %v264_v49 = vadd.f32 -1.0, %v228_v48 }
  0xa1   :  { %v230_v50 = vmul.f32 4.0, %v264_v49 }
  0xa3   :  { %v231_v52 = vmul.f32 1.442695, %v230_v50 }
  0xa5   :  { %269 = vpow2.f32 %v231_v52 }
  0xab   :  { %v270_v55 = vpop.eup %269 }
  0xac   :  { %v244_v56 = vsel %vm243_vm2, 0.0, %v270_v55 }
  0xad   :  { %v247_v57 = vsel %vm246_vm3, %v244_v56, 0.0 }
  0xae   :  { %248 = vadd.xlane.f32.xlu0 %v247_v57 }
 0x121   :  { %v249_v59 = vpop.xlane.xlu0 %248 }
 0x122   :  { %v250_v60 = vadd.f32 %v249_v59, %v245_v58 }
 0x124   :  { %252 = vst.msk [vmem:[%s343_s4] sm:$0xff] %vm21_vm1, %v250_v60 }
 0x12b   :  { %v256_v61 = vld [vmem:[%s343_s4] sm:$0xff] }
 0x12c   :  { %271 = vlog2.f32 %v256_v61 }
 0x132   :  { %v272_v62 = vpop.eup %271 }
 0x133   :  { %v258_v63 = vmul.f32 0.6931472, %v272_v62 }
 0x135   :  { %259 = vst.msk [vmem:[%s343_s4] sm:$0xff] %vm21_vm1, %v258_v63 }

</bundles_post_ra>
